<compile_context>
chip_gen: v5e
topology: v5e:2x2
jax: 0.10.0
libtpu: 0.0.40
codegen_flags: <defaults>
</compile_context>

<pallas_src>
import jax
import jax.numpy as jnp
from jax.experimental import pallas as pl
from jax.experimental.pallas import tpu as pltpu


_FUSED_MAX_HW = 1024                 # K = (HW, HW) f32 is <= 4 MiB up to here
_VMEM_BUDGET = 10 * 1024 * 1024      # fits v5e's 16 MiB default scoped VMEM


def _dft_cos_sin(n: int):
    """Symmetric DFT cos/sin matrices of size (n, n), f32."""
    idx = jnp.arange(n, dtype=jnp.int32)
    # Reduce (j*k) mod n in integers before scaling: keeps the f32 angle exact
    # even for large n (int32 is fine for n up to ~46k).
    jk = jnp.mod(jnp.outer(idx, idx), n).astype(jnp.float32)
    ang = (2.0 * jnp.pi / float(n)) * jk
    return jnp.cos(ang), jnp.sin(ang)


# ---------------------------------------------------------------------------
# Fused Kronecker path (small H*W): one lane-dense MXU matmul per block.
# ---------------------------------------------------------------------------
def _fft2_real_fused_kernel(x_ref, k_ref, o_ref):
    # (TB, HW) @ (HW, HW) -> (TB, HW); K is symmetric so no transpose needed.
    o_ref[...] = jnp.dot(x_ref[...], k_ref[...],
                         preferred_element_type=jnp.float32).astype(o_ref.dtype)


def _choose_tb_fused(lead: int, hw: int) -> int:
    """Rows per block for the fused path (multiple of 8 for sublane tiling)."""
    if lead <= 8:
        return lead                    # single block == full leading dim
    # Working set: double-buffered in/out blocks (4 * tb * hw f32) plus the
    # two pipeline buffers holding K (2 * hw * hw f32).
    k_bytes = 2 * hw * hw * 4
    row_bytes = 4 * hw * 4
    rows = max(8, (_VMEM_BUDGET - k_bytes) // row_bytes)
    # Keep >= ~8 grid steps so both v7x TensorCores get work and the pipeline
    # overlaps DMA with compute (per-step overhead ~0.35us is negligible at
    # multi-MiB blocks).
    rows = min(rows, max(8, (lead + 7) // 8))
    return max(8, (rows // 8) * 8)


def _fft2_real_fused(x2: jax.Array, kmat: jax.Array, lead: int, hw: int):
    tb = _choose_tb_fused(lead, hw)
    n_blocks = pl.cdiv(lead, tb)       # partial last block handled by masking
    return pl.pallas_call(
        _fft2_real_fused_kernel,
        out_shape=jax.ShapeDtypeStruct((lead, hw), jnp.float32),
        grid_spec=pltpu.PrefetchScalarGridSpec(
            num_scalar_prefetch=0,
            grid=(n_blocks,),
            in_specs=[
                pl.BlockSpec((tb, hw), lambda i: (i, 0)),   # x block
                pl.BlockSpec((hw, hw), lambda i: (0, 0)),   # K (grid-invariant)
            ],
            out_specs=pl.BlockSpec((tb, hw), lambda i: (i, 0)),
        ),
        compiler_params=pltpu.CompilerParams(
            dimension_semantics=("parallel",)),
    )(x2, kmat)


# ---------------------------------------------------------------------------
# Separable path (large H*W): two flat matmul stages, no broadcast_to.
# ---------------------------------------------------------------------------
def _fft2_real_separable_kernel(x_ref, cw_ref, sw_ref, ch_ref, sh_ref, o_ref):
    tb, h, w = x_ref.shape
    # Stage 1: DFT along W for all TB slabs with one flat matmul.
    x2 = x_ref[...].reshape(tb * h, w)
    y_re = jnp.dot(x2, cw_ref[...], preferred_element_type=jnp.float32)   # Re(Y)
    y_imn = jnp.dot(x2, sw_ref[...], preferred_element_type=jnp.float32)  # -Im(Y)
    # Stage 2: DFT along H, also one flat matmul on transposed slabs (the
    # transposes land in the otherwise-idle XLU slot):
    #   Z^T = Re(Y)^T @ Ch - (-Im(Y))^T @ Sh        (Ch, Sh symmetric)
    y_re_t = jnp.swapaxes(y_re.reshape(tb, h, w), 1, 2).reshape(tb * w, h)
    y_imn_t = jnp.swapaxes(y_imn.reshape(tb, h, w), 1, 2).reshape(tb * w, h)
    z_t = (jnp.dot(y_re_t, ch_ref[...], preferred_element_type=jnp.float32)
           - jnp.dot(y_imn_t, sh_ref[...], preferred_element_type=jnp.float32))
    z = jnp.swapaxes(z_t.reshape(tb, w, h), 1, 2)
    o_ref[...] = z.astype(o_ref.dtype)
    # TODO(synk): for W < 128 the output last dim is not lane-dense on this
    # path; production shapes hitting it should have W >= 128.


def _choose_tb_separable(lead: int, h: int, w: int) -> int:
    """Slabs per block for the separable path (3-D block: leading dim is free)."""
    wpad, hpad = max(w, 128), max(h, 128)
    # Double-buffered DFT matrices + ~10 block-sized f32 buffers (in/out double
    # buffers plus stage intermediates / transposes), lane-padded to 128.
    mat_bytes = 2 * 2 * 4 * (h * hpad + w * wpad)
    slab_bytes = 10 * h * wpad * 4
    tb = max(1, (_VMEM_BUDGET - mat_bytes) // slab_bytes)
    tb = min(tb, max(1, (lead + 7) // 8))   # keep >= ~8 grid steps when possible
    return max(1, min(tb, lead))


def _fft2_real_separable(x3, cw, sw, ch, sh, lead, h, w):
    tb = _choose_tb_separable(lead, h, w)
    n_blocks = pl.cdiv(lead, tb)
    return pl.pallas_call(
        _fft2_real_separable_kernel,
        out_shape=jax.ShapeDtypeStruct((lead, h, w), jnp.float32),
        grid_spec=pltpu.PrefetchScalarGridSpec(
            num_scalar_prefetch=0,
            grid=(n_blocks,),
            in_specs=[
                pl.BlockSpec((tb, h, w), lambda i: (i, 0, 0)),   # x block
                pl.BlockSpec((w, w), lambda i: (0, 0)),          # C_w
                pl.BlockSpec((w, w), lambda i: (0, 0)),          # S_w
                pl.BlockSpec((h, h), lambda i: (0, 0)),          # C_h
                pl.BlockSpec((h, h), lambda i: (0, 0)),          # S_h
            ],
            out_specs=pl.BlockSpec((tb, h, w), lambda i: (i, 0, 0)),
        ),
        compiler_params=pltpu.CompilerParams(
            dimension_semantics=("parallel",)),
    )(x3, cw, sw, ch, sh)


# ---------------------------------------------------------------------------
# Public wrapper.
# ---------------------------------------------------------------------------
def fft_layer_forward(x: jax.Array) -> jax.Array:
    """Pallas implementation of FFTLayer.forward: fft(fft(x, -1), -2).real."""
    orig_shape = x.shape
    h, w = int(orig_shape[-2]), int(orig_shape[-1])
    lead = 1
    for d in orig_shape[:-2]:
        lead *= int(d)
    lead = max(lead, 1)
    hw = h * w

    xf = x.astype(jnp.float32)          # autocast(enabled=False): f32 compute
    ch, sh = _dft_cos_sin(h)            # (H, H)
    cw, sw = _dft_cos_sin(w)            # (W, W)

    if hw <= _FUSED_MAX_HW:
        # vec(Re(Z)) = vec(x) @ K, K = kron(Ch, Cw) - kron(Sh, Sw) (symmetric),
        # matching row-major flattening of the (H, W) axes.
        kmat = jnp.kron(ch, cw) - jnp.kron(sh, sw)            # (HW, HW) f32
        out = _fft2_real_fused(xf.reshape(lead, hw), kmat, lead, hw)
    else:
        out = _fft2_real_separable(xf.reshape(lead, h, w), cw, sw, ch, sh,
                                   lead, h, w)
    return out.reshape(orig_shape)


if __name__ == "__main__":
    key = jax.random.PRNGKey(0)
    B, C, Hdim, Wdim = 2, 4, 16, 16
    x = jax.random.normal(key, (B, C, Hdim, Wdim), dtype=jnp.float32)

    y = jax.jit(fft_layer_forward)(x)
    jax.block_until_ready(y)

    ref = jnp.real(jnp.fft.fft(jnp.fft.fft(x, axis=-1), axis=-2)).astype(jnp.float32)
    assert y.shape == x.shape and y.dtype == jnp.float32
    assert jnp.allclose(y, ref, atol=1e-3, rtol=1e-3), "fused path mismatch vs FFT"

    # Also exercise the separable (large H*W) path once at a small shape.
    x2 = jax.random.normal(jax.random.PRNGKey(0), (2, 3, 32, 48), dtype=jnp.float32)
    y2 = jax.jit(fft_layer_forward)(x2)
    jax.block_until_ready(y2)
    ref2 = jnp.real(jnp.fft.fft(jnp.fft.fft(x2, axis=-1), axis=-2)).astype(jnp.float32)
    assert y2.shape == x2.shape and y2.dtype == jnp.float32
    assert jnp.allclose(y2, ref2, atol=1e-3, rtol=1e-3), "separable path mismatch vs FFT"

    print("KERNEL_OK")
</pallas_src>

<mosaic_0001>
module attributes {stable_mosaic.version = 11 : i64} {
  func.func @_fft2_real_fused_kernel(%arg0: i32, %arg1: memref<8x256xf32, #tpu.memory_space<vmem>>, %arg2: memref<256x256xf32, #tpu.memory_space<vmem>>, %arg3: memref<8x256xf32, #tpu.memory_space<vmem>>) attributes {dimension_semantics = [#tpu.dimension_semantics<parallel>], iteration_bounds = array<i64: 1>, scalar_prefetch = 0 : i64, scratch_operands = 0 : i64, tpu.core_type = #tpu.core_type<tc>, window_params = [{transform_indices = @transform_0, window_bounds = array<i64: 8, 256>}, {pipeline_mode = #tpu.pipeline_mode<synchronous>, transform_indices = @transform_1, window_bounds = array<i64: 256, 256>}, {transform_indices = @transform_2, window_bounds = array<i64: 8, 256>}]} {
    %c0 = arith.constant 0 : index
    %c0_0 = arith.constant 0 : index
    %0 = vector.load %arg1[%c0, %c0_0] : memref<8x256xf32, #tpu.memory_space<vmem>>, vector<8x256xf32>
    %c0_1 = arith.constant 0 : index
    %c0_2 = arith.constant 0 : index
    %1 = vector.load %arg2[%c0_1, %c0_2] : memref<256x256xf32, #tpu.memory_space<vmem>>, vector<256x256xf32>
    %cst = arith.constant dense<0.000000e+00> : vector<8x256xf32>
    %2 = tpu.matmul %0, %1, %cst {dimension_numbers = #tpu.dot_dimension_numbers<[1], [0], [0], [1], [0, 0, 1, 1], [], []>} : vector<8x256xf32>, vector<256x256xf32>, vector<8x256xf32> -> vector<8x256xf32>
    %c0_3 = arith.constant 0 : index
    %c0_4 = arith.constant 0 : index
    %3 = vector.load %arg3[%c0_3, %c0_4] : memref<8x256xf32, #tpu.memory_space<vmem>>, vector<8x256xf32>
    tpu.vector_store %arg3[%c0_3, %c0_4], %2 {strides = array<i32>} : memref<8x256xf32, #tpu.memory_space<vmem>>, vector<8x256xf32>,
    return
  }
  func.func @transform_0(%arg0: i32) -> (i32, i32) {
    %c0_i32 = arith.constant 0 : i32
    %c0_i32_0 = arith.constant 0 : i32
    return %arg0, %c0_i32 : i32, i32
  }
  func.func @transform_1(%arg0: i32) -> (i32, i32) {
    %c0_i32 = arith.constant 0 : i32
    %c0_i32_0 = arith.constant 0 : i32
    %c0_i32_1 = arith.constant 0 : i32
    return %c0_i32, %c0_i32_0 : i32, i32
  }
  func.func @transform_2(%arg0: i32) -> (i32, i32) {
    %c0_i32 = arith.constant 0 : i32
    %c0_i32_0 = arith.constant 0 : i32
    return %arg0, %c0_i32 : i32, i32
  }
}

</mosaic_0001>

<bundles_post_ra>
// kernel: fft_layer_forward.1
= control target key start
LH: loop header
LB: loop body
LE: loop exit
PB: predicated region body
PF: predicated region fallthrough
CT: control target
= control target key end

     0   :  { %s382_s1 = inlined_call_operand.vmem [shape: f32[256,256], index: 1, kind: input, shape index: {}]   ;;  %s383_s0 = inlined_call_operand.vmem [shape: f32[8,256], index: 0, kind: input, shape index: {}]   ;;  %s384_s2 = inlined_call_operand.vmem [shape: f32[8,256], index: 2, kind: output, shape index: {}]  }
   0x1   :  { %v44_v0 = vld [vmem:[%s382_s1 + $0xf8] sm:$0xff]  ;;  %v42_v2 = vld [vmem:[%s382_s1 + $0xe8] sm:$0xff]  ;;  %v43_v6 = vld [vmem:[%s382_s1 + $0xf0] sm:$0xff] }
   0x2   :  { %v76_v1 = vld [vmem:[%s382_s1 + $0x1f8] sm:$0xff]  ;;  %117 = vmatpush.msra.mxu2 %v44_v0  ;;  %v74_v3 = vld [vmem:[%s382_s1 + $0x1e8] sm:$0xff]  ;;  %v75_v7 = vld [vmem:[%s382_s1 + $0x1f0] sm:$0xff]  ;;  %77 = vmatpush.msra.mxu0 %v43_v6 }
   0x3   :  { %137 = vmatpush.msra.mxu3 %v76_v1  ;;  %v40_v4 = vld [vmem:[%s382_s1 + $0xd8] sm:$0xff]  ;;  %v41_v8 = vld [vmem:[%s382_s1 + $0xe0] sm:$0xff]  ;;  %97 = vmatpush.msra.mxu1 %v75_v7  ;;  %v38_v10 = vld [vmem:[%s382_s1 + $0xc8] sm:$0xff] }
   0x4   :  { %v72_v5 = vld [vmem:[%s382_s1 + $0x1d8] sm:$0xff]  ;;  %118 = vmatpush.msra.mxu2 %v42_v2  ;;  %v73_v9 = vld [vmem:[%s382_s1 + $0x1e0] sm:$0xff]  ;;  %v70_v11 = vld [vmem:[%s382_s1 + $0x1c8] sm:$0xff]  ;;  %78 = vmatpush.msra.mxu0 %v41_v8 }
   0x5   :  { %138 = vmatpush.msra.mxu3 %v74_v3  ;;  %v39_v12 = vld [vmem:[%s382_s1 + $0xd0] sm:$0xff]  ;;  %98 = vmatpush.msra.mxu1 %v73_v9  ;;  %v36_v14 = vld [vmem:[%s382_s1 + $0xb8] sm:$0xff]  ;;  %v37_v16 = vld [vmem:[%s382_s1 + $0xc0] sm:$0xff] }
   0x6   :  { %119 = vmatpush.msra.mxu2 %v40_v4  ;;  %v71_v13 = vld [vmem:[%s382_s1 + $0x1d0] sm:$0xff]  ;;  %v68_v15 = vld [vmem:[%s382_s1 + $0x1b8] sm:$0xff]  ;;  %v69_v17 = vld [vmem:[%s382_s1 + $0x1c0] sm:$0xff]  ;;  %79 = vmatpush.msra.mxu0 %v39_v12 }
   0x7   :  { %139 = vmatpush.msra.mxu3 %v72_v5  ;;  %99 = vmatpush.msra.mxu1 %v71_v13  ;;  %v34_v18 = vld [vmem:[%s382_s1 + $0xa8] sm:$0xff]  ;;  %v35_v20 = vld [vmem:[%s382_s1 + $0xb0] sm:$0xff]  ;;  %v32_v22 = vld [vmem:[%s382_s1 + $0x98] sm:$0xff] }
   0x8   :  { %120 = vmatpush.msra.mxu2 %v38_v10  ;;  %v66_v19 = vld [vmem:[%s382_s1 + $0x1a8] sm:$0xff]  ;;  %v67_v21 = vld [vmem:[%s382_s1 + $0x1b0] sm:$0xff]  ;;  %80 = vmatpush.msra.mxu0 %v37_v16  ;;  %v64_v23 = vld [vmem:[%s382_s1 + $0x198] sm:$0xff] }
   0x9   :  { %140 = vmatpush.msra.mxu3 %v70_v11  ;;  %100 = vmatpush.msra.mxu1 %v69_v17  ;;  %v33_v24 = vld [vmem:[%s382_s1 + $0xa0] sm:$0xff]  ;;  %v30_v26 = vld [vmem:[%s382_s1 + $0x88] sm:$0xff]  ;;  %v31_v28 = vld [vmem:[%s382_s1 + $0x90] sm:$0xff] }
   0xa   :  { %121 = vmatpush.msra.mxu2 %v36_v14  ;;  %v65_v25 = vld [vmem:[%s382_s1 + $0x1a0] sm:$0xff]  ;;  %81 = vmatpush.msra.mxu0 %v35_v20  ;;  %v62_v27 = vld [vmem:[%s382_s1 + $0x188] sm:$0xff]  ;;  %v63_v29 = vld [vmem:[%s382_s1 + $0x190] sm:$0xff] }
   0xb   :  { %141 = vmatpush.msra.mxu3 %v68_v15  ;;  %101 = vmatpush.msra.mxu1 %v67_v21  ;;  %v28_v30 = vld [vmem:[%s382_s1 + $0x78] sm:$0xff]  ;;  %v29_v32 = vld [vmem:[%s382_s1 + $0x80] sm:$0xff]  ;;  %v26_v34 = vld [vmem:[%s382_s1 + $0x68] sm:$0xff] }
   0xc   :  { %122 = vmatpush.msra.mxu2 %v34_v18  ;;  %82 = vmatpush.msra.mxu0 %v33_v24  ;;  %v60_v31 = vld [vmem:[%s382_s1 + $0x178] sm:$0xff]  ;;  %v61_v33 = vld [vmem:[%s382_s1 + $0x180] sm:$0xff]  ;;  %v58_v35 = vld [vmem:[%s382_s1 + $0x168] sm:$0xff] }
   0xd   :  { %142 = vmatpush.msra.mxu3 %v66_v19  ;;  %102 = vmatpush.msra.mxu1 %v65_v25  ;;  %v27_v36 = vld [vmem:[%s382_s1 + $0x70] sm:$0xff]  ;;  %v24_v38 = vld [vmem:[%s382_s1 + $0x58] sm:$0xff]  ;;  %v25_v40 = vld [vmem:[%s382_s1 + $0x60] sm:$0xff] }
   0xe   :  { %123 = vmatpush.msra.mxu2 %v32_v22  ;;  %83 = vmatpush.msra.mxu0 %v31_v28  ;;  %v59_v37 = vld [vmem:[%s382_s1 + $0x170] sm:$0xff]  ;;  %v56_v39 = vld [vmem:[%s382_s1 + $0x158] sm:$0xff]  ;;  %v57_v41 = vld [vmem:[%s382_s1 + $0x160] sm:$0xff] }
   0xf   :  { %143 = vmatpush.msra.mxu3 %v64_v23  ;;  %103 = vmatpush.msra.mxu1 %v63_v29  ;;  %v22_v42 = vld [vmem:[%s382_s1 + $0x48] sm:$0xff]  ;;  %v23_v44 = vld [vmem:[%s382_s1 + $0x50] sm:$0xff]  ;;  %v20_v46 = vld [vmem:[%s382_s1 + $0x38] sm:$0xff] }
  0x10   :  { %124 = vmatpush.msra.mxu2 %v30_v26  ;;  %84 = vmatpush.msra.mxu0 %v29_v32  ;;  %v54_v43 = vld [vmem:[%s382_s1 + $0x148] sm:$0xff]  ;;  %v55_v45 = vld [vmem:[%s382_s1 + $0x150] sm:$0xff]  ;;  %v52_v47 = vld [vmem:[%s382_s1 + $0x138] sm:$0xff] }
  0x11   :  { %144 = vmatpush.msra.mxu3 %v62_v27  ;;  %104 = vmatpush.msra.mxu1 %v61_v33  ;;  %v21_v48 = vld [vmem:[%s382_s1 + $0x40] sm:$0xff]  ;;  %v18_v50 = vld [vmem:[%s382_s1 + $0x28] sm:$0xff]  ;;  %v19_v52 = vld [vmem:[%s382_s1 + $0x30] sm:$0xff] }
  0x12   :  { %125 = vmatpush.msra.mxu2 %v28_v30  ;;  %85 = vmatpush.msra.mxu0 %v27_v36  ;;  %v53_v49 = vld [vmem:[%s382_s1 + $0x140] sm:$0xff]  ;;  %v50_v51 = vld [vmem:[%s382_s1 + $0x128] sm:$0xff]  ;;  %v51_v53 = vld [vmem:[%s382_s1 + $0x130] sm:$0xff] }
  0x13   :  { %145 = vmatpush.msra.mxu3 %v60_v31  ;;  %105 = vmatpush.msra.mxu1 %v59_v37  ;;  %v16_v54 = vld [vmem:[%s382_s1 + $0x18] sm:$0xff]  ;;  %v17_v56 = vld [vmem:[%s382_s1 + $0x20] sm:$0xff]  ;;  %v14_v58 = vld [vmem:[%s382_s1 + $0x8] sm:$0xff] }
  0x14   :  { %126 = vmatpush.msra.mxu2 %v26_v34  ;;  %86 = vmatpush.msra.mxu0 %v25_v40  ;;  %v48_v55 = vld [vmem:[%s382_s1 + $0x118] sm:$0xff]  ;;  %v49_v57 = vld [vmem:[%s382_s1 + $0x120] sm:$0xff]  ;;  %v46_v59 = vld [vmem:[%s382_s1 + $0x108] sm:$0xff] }
  0x15   :  { %146 = vmatpush.msra.mxu3 %v58_v35  ;;  %106 = vmatpush.msra.mxu1 %v57_v41  ;;  %v11_v60 = vld [vmem:[%s383_s0] sm:$0xff]  ;;  %v12_v61 = vld [vmem:[%s383_s0 + $0x8] sm:$0xff]  ;;  %v15_v62 = vld [vmem:[%s382_s1 + $0x10] sm:$0xff] }
  0x16   :  { %127 = vmatpush.msra.mxu2 %v24_v38  ;;  %87 = vmatpush.msra.mxu0 %v23_v44  ;;  %v47_v63 = vld [vmem:[%s382_s1 + $0x110] sm:$0xff]  ;;  %v13_v0 = vld [vmem:[%s382_s1] sm:$0xff] }
  0x17   :  { %147 = vmatpush.msra.mxu3 %v56_v39  ;;  %107 = vmatpush.msra.mxu1 %v55_v45  ;;  %v45_v1 = vld [vmem:[%s382_s1 + $0x100] sm:$0xff] }
  0x18   :  { %128 = vmatpush.msra.mxu2 %v22_v42  ;;  %88 = vmatpush.msra.mxu0 %v21_v48 }
  0x19   :  { %148 = vmatpush.msra.mxu3 %v54_v43  ;;  %108 = vmatpush.msra.mxu1 %v53_v49 }
  0x1a   :  { %129 = vmatpush.msra.mxu2 %v20_v46  ;;  %89 = vmatpush.msra.mxu0 %v19_v52 }
  0x1b   :  { %149 = vmatpush.msra.mxu3 %v52_v47  ;;  %109 = vmatpush.msra.mxu1 %v51_v53 }
  0x1c   :  { %130 = vmatpush.msra.mxu2 %v18_v50  ;;  %90 = vmatpush.msra.mxu0 %v17_v56 }
  0x1d   :  { %150 = vmatpush.msra.mxu3 %v50_v51  ;;  %110 = vmatpush.msra.mxu1 %v49_v57 }
  0x1e   :  { %131 = vmatpush.msra.mxu2 %v16_v54  ;;  %91 = vmatpush.msra.mxu0 %v15_v62 }
  0x1f   :  { %151 = vmatpush.msra.mxu3 %v48_v55  ;;  %111 = vmatpush.msra.mxu1 %v47_v63 }
  0x20   :  { %132 = vmatpush.msra.mxu2 %v14_v58  ;;  %92 = vmatpush.msra.mxu0 %v13_v0 }
  0x21   :  { %152 = vmatpush.msra.mxu3 %v46_v59  ;;  %133 = vmatmul.f32.vlgmr.msra.gmra.mxu2 %v11_v60 }
  0x22   :  { %153 = vmatmul.f32.vlgmr.msra.gmra.mxu3 %v12_v61  ;;  %112 = vmatpush.msra.mxu1 %v45_v1 }
  0x23   :  { %93 = vmatmul.f32.vlgmr.msra.gmra.mxu0 %v11_v60  ;;  %113 = vmatmul.f32.vlgmr.msra.gmra.mxu1 %v12_v61 }
  0xa0   :  { %v94_v2 = vpop.f32.mrf.mxu0  ;;  %v114_v3 = vpop.f32.mrf.mxu1 }
  0xa1   :  { %v115_v4 = vadd.f32 %v114_v3, %v94_v2 }
  0xa3   :  { %157 = vst [vmem:[%s384_s2] sm:$0xff] %v115_v4 }
  0xa4   :  { %v134_v5 = vpop.f32.mrf.mxu2 }
  0xa5   :  { %v154_v6 = vpop.f32.mrf.mxu3 }
  0xa6   :  { %v155_v7 = vadd.f32 %v154_v6, %v134_v5 }
  0xa8   :  { %158 = vst [vmem:[%s384_s2 + $0x8] sm:$0xff] %v155_v7 }

</bundles_post_ra>
